<compile_context>
chip_gen: v7x
topology: tpu7x:2x2x1
jax: 0.10.0
libtpu: 0.0.40
codegen_flags: <defaults>
</compile_context>

<pallas_src>
import functools
import numpy as np
import jax
import jax.numpy as jnp
from jax.experimental import pallas as pl
from jax.experimental.pallas import tpu as pltpu


# ----------------------------------------------------------------------------
# Kernel 1: per-image fused 3x3 conv (pad=1) + folded-BN + bias + ReLU.
#
# The padded activation of one image is flattened to (Cin, Lp) with Lp=(H+2)*(W+2)
# (spatial on lanes, channels on sublanes).  Conv output at band position r needs the
# 9 neighbours at lane r + dy*(W+2) + dx, so tap (dy, dx) is a contiguous lane-window.
# All 9 windows are concatenated along K -> one (Cout, 9*Cin) @ (9*Cin, n) matmul,
# f32 accumulate, bias + ReLU fused, bf16 lane-dense store.
# ----------------------------------------------------------------------------
def _conv3x3_kernel(x_ref, w_ref, b_ref, o_ref, *, Wp, n):
    # x_ref: (1, Cin, Lp) bf16   w_ref: (Cout, 9*Cin) bf16   b_ref: (Cout, 1) f32
    # o_ref: (1, Cout, n) bf16   with n = Lp - 2*(Wp+1)
    x = x_ref[0]                                          # (Cin, Lp), stays in VMEM
    taps = []
    for t in range(9):
        dy, dx = divmod(t, 3)
        off = dy * Wp + dx                                # static lane offset
        taps.append(x[:, off:off + n])                    # (Cin, n) shifted window
    patches = jnp.concatenate(taps, axis=0)               # (9*Cin, n) bf16, K-concat
    acc = jnp.dot(w_ref[...], patches,
                  preferred_element_type=jnp.float32)     # single MXU matmul, K=9*Cin
    o_ref[0] = jnp.maximum(acc + b_ref[...], 0.0).astype(o_ref.dtype)
    # TODO(synk): mask/skip the junk band rows (padded-border positions) instead of
    # computing and cropping them, and fuse the 2x2 max-pool into this epilogue.


def conv3x3(band_in, w_t, bias, H, W):
    """band_in: (B, Cin, (H+2)*(W+2)) bf16 -> (B, Cout, n) bf16."""
    B, Cin, Lp = band_in.shape
    Wp = W + 2
    n = Lp - 2 * (Wp + 1)
    Cout = w_t.shape[0]
    kernel = functools.partial(_conv3x3_kernel, Wp=Wp, n=n)
    return pl.pallas_call(
        kernel,
        out_shape=jax.ShapeDtypeStruct((B, Cout, n), jnp.bfloat16),
        grid=(B,),
        in_specs=[
            pl.BlockSpec((1, Cin, Lp), lambda i: (i, 0, 0)),
            pl.BlockSpec((Cout, 9 * Cin), lambda i: (0, 0)),
            pl.BlockSpec((Cout, 1), lambda i: (0, 0)),
        ],
        out_specs=pl.BlockSpec((1, Cout, n), lambda i: (i, 0, 0)),
        compiler_params=pltpu.CompilerParams(
            dimension_semantics=("parallel",),
            vmem_limit_bytes=32 * 1024 * 1024),
    )(band_in, w_t, bias)


def image_to_band(x):
    """NCHW (B, C, H, W) -> zero-padded flattened (B, C, (H+2)*(W+2)) bf16."""
    B, C, H, W = x.shape
    xp = jnp.pad(x.astype(jnp.bfloat16), ((0, 0), (0, 0), (1, 1), (1, 1)))
    return xp.reshape(B, C, (H + 2) * (W + 2))


def band_to_image(band, H, W):
    """Inverse band layout: (B, C, n) -> (B, C, H, W) (drops junk border rows)."""
    B, C, _ = band.shape
    Wp = W + 2
    P0 = Wp + 1
    full = jnp.pad(band, ((0, 0), (0, 0), (P0, P0)))
    return full.reshape(B, C, H + 2, Wp)[:, :, 1:H + 1, 1:W + 1]


def maxpool2x2(x):
    B, C, H, W = x.shape
    x = x[:, :, :(H // 2) * 2, :(W // 2) * 2]
    return x.reshape(B, C, H // 2, 2, W // 2, 2).max(axis=(3, 5))


# ----------------------------------------------------------------------------
# Kernel 2: fused localization head + grid generator.
#   fc1 -> relu -> fc2 (x/y split) -> ex_fc (x/y split)
#   g = [cpx;cpy] @ A_top + [exx;exy] @ A_bot     (A = (P_hat @ inv_delta_C)^T, host const)
# Single (2B, n) lane-dense output; host splits into grid_x / grid_y.
# ----------------------------------------------------------------------------
def _loc_head_kernel(feat_ref, w1_ref, b1_ref,
                     w2x_ref, b2x_ref, w2y_ref, b2y_ref,
                     wxx_ref, wyx_ref, wxy_ref, wyy_ref, bx_ref, by_ref,
                     atop_ref, abot_ref, g_ref):
    f1 = jnp.maximum(
        jnp.dot(feat_ref[...], w1_ref[...], preferred_element_type=jnp.float32)
        + b1_ref[...], 0.0)
    cpx = jnp.dot(f1, w2x_ref[...], preferred_element_type=jnp.float32) + b2x_ref[...]
    cpy = jnp.dot(f1, w2y_ref[...], preferred_element_type=jnp.float32) + b2y_ref[...]
    exx = (jnp.dot(cpx, wxx_ref[...], preferred_element_type=jnp.float32)
           + jnp.dot(cpy, wyx_ref[...], preferred_element_type=jnp.float32) + bx_ref[...])
    exy = (jnp.dot(cpx, wxy_ref[...], preferred_element_type=jnp.float32)
           + jnp.dot(cpy, wyy_ref[...], preferred_element_type=jnp.float32) + by_ref[...])
    cp = jnp.concatenate([cpx, cpy], axis=0)              # (2B, F)  better sublane fill
    ex = jnp.concatenate([exx, exy], axis=0)              # (2B, 3)
    g_ref[...] = (jnp.dot(cp, atop_ref[...], preferred_element_type=jnp.float32)
                  + jnp.dot(ex, abot_ref[...], preferred_element_type=jnp.float32))


def loc_head_and_grid(feat, params, n):
    B = feat.shape[0]
    g = pl.pallas_call(
        _loc_head_kernel,
        out_shape=jax.ShapeDtypeStruct((2 * B, n), jnp.float32),
    )(feat.astype(jnp.float32),
      params["fc1_w"], params["fc1_b"],
      params["w2x"], params["b2x"], params["w2y"], params["b2y"],
      params["wxx"], params["wyx"], params["wxy"], params["wyy"],
      params["bex_x"], params["bex_y"],
      params["A_top"], params["A_bot"])
    return g[:B], g[B:2 * B]                               # grid_x, grid_y  (B, n) each


# ----------------------------------------------------------------------------
# Kernel 3: bilinear grid_sample (align_corners=False, padding_mode='zeros').
# Factored blend:
#   stage A (MXU): x-blend   A = img(C*Hin, Win) @ WX(Win, To)   — WX has <=2 nonzeros/col
#   stage B (VPU): y-blend   out[c] = sum_y WY[y] * A[c, y]      — WY has <=2 nonzeros/col
# Selection builds are O(Win*To) + O(Hin*To) instead of O(Hin*Win*To).
# ----------------------------------------------------------------------------
def _grid_sample_kernel(gx_ref, gy_ref, img_ref, o_ref, *, Hin, Win, C):
    gx = gx_ref[0]                                         # (1, To)
    gy = gy_ref[0]
    ix = ((gx + 1.0) * Win - 1.0) * 0.5                    # align_corners=False
    iy = ((gy + 1.0) * Hin - 1.0) * 0.5
    ix0f = jnp.floor(ix)
    iy0f = jnp.floor(iy)
    wx1 = ix - ix0f
    wx0 = 1.0 - wx1
    wy1 = iy - iy0f
    wy0 = 1.0 - wy1
    ix0 = ix0f.astype(jnp.int32)
    iy0 = iy0f.astype(jnp.int32)
    ix1 = ix0 + 1
    iy1 = iy0 + 1
    To = gx.shape[-1]

    # x-selection matrix WX (Win, To): wx0 at row ix0, wx1 at row ix1, OOB -> 0 (zeros pad).
    col = jax.lax.broadcasted_iota(jnp.int32, (Win, To), 0)
    wxm = jnp.zeros((Win, To), jnp.float32)
    for xx, w in ((ix0, wx0), (ix1, wx1)):
        w = jnp.where((xx >= 0) & (xx < Win), w, 0.0)
        wxm = wxm + jnp.where(col == xx, w, 0.0)

    # One MXU matmul contracts over Win; bf16 operands, f32 accumulate.
    a = jnp.dot(img_ref[0], wxm.astype(jnp.bfloat16),
                preferred_element_type=jnp.float32)        # (C*Hin, To)

    # y-selection weights WY (Hin, To), then per-channel weighted reduce over Hin.
    row = jax.lax.broadcasted_iota(jnp.int32, (Hin, To), 0)
    wym = jnp.zeros((Hin, To), jnp.float32)
    for yy, w in ((iy0, wy0), (iy1, wy1)):
        w = jnp.where((yy >= 0) & (yy < Hin), w, 0.0)
        wym = wym + jnp.where(row == yy, w, 0.0)

    a3 = a.reshape(C, Hin, To)
    o_ref[0] = jnp.sum(a3 * wym[None, :, :], axis=1)       # (C, To) lane-dense
    # TODO(synk): for very large crops, band Hin per output tile via scalar-prefetched
    # row bounds (PrefetchScalarGridSpec) to shrink the resident image slab further.


def grid_sample_bilinear(gx, gy, img_rows, Hin, Win):
    """gx, gy: (B, 1, HWo) f32 ; img_rows: (B, C*Hin, Win) bf16 -> (B, C, HWo) f32."""
    B, _, HWo = gx.shape
    CH = img_rows.shape[1]
    C = CH // Hin
    for cand in (512, 256, 128):
        if HWo % cand == 0:
            To = cand
            break
    else:
        To = HWo
    kernel = functools.partial(_grid_sample_kernel, Hin=Hin, Win=Win, C=C)
    return pl.pallas_call(
        kernel,
        out_shape=jax.ShapeDtypeStruct((B, C, HWo), jnp.float32),
        grid=(B, HWo // To),
        in_specs=[
            pl.BlockSpec((1, 1, To), lambda i, j: (i, 0, j)),
            pl.BlockSpec((1, 1, To), lambda i, j: (i, 0, j)),
            pl.BlockSpec((1, CH, Win), lambda i, j: (i, 0, 0)),
        ],
        out_specs=pl.BlockSpec((1, C, To), lambda i, j: (i, 0, j)),
        compiler_params=pltpu.CompilerParams(
            dimension_semantics=("parallel", "parallel"),
            vmem_limit_bytes=32 * 1024 * 1024),
    )(gx, gy, img_rows)


# ----------------------------------------------------------------------------
# Host-side TPS constants (float64 numpy, exactly as the PyTorch module builds them).
# ----------------------------------------------------------------------------
def build_C(F):
    x = np.linspace(-1.0, 1.0, F // 2, dtype=np.float64)
    top = np.stack([x, -np.ones(F // 2)], axis=1)
    bot = np.stack([x, np.ones(F // 2)], axis=1)
    return np.concatenate([top, bot], axis=0)                       # (F, 2)


def build_P(H, W):
    gx = (np.arange(-W, W, 2, dtype=np.float64) + 1.0) / W
    gy = (np.arange(-H, H, 2, dtype=np.float64) + 1.0) / H
    X, Y = np.meshgrid(gx, gy, indexing="ij")                       # (W, H)
    P = np.stack([X, Y], axis=2).transpose(1, 0, 2)                 # (H, W, 2) (x, y)
    return P.reshape(-1, 2)                                         # (H*W, 2)


def build_inv_delta_C(C, F):
    hat_eye = np.eye(F)
    hat_C = np.linalg.norm(C[None, :, :] - C[:, None, :], axis=2) + hat_eye
    hat_C = hat_C ** 2 * np.log(hat_C)
    delta_C = np.concatenate(
        [np.concatenate([np.ones((F, 1)), C, hat_C], axis=1),
         np.concatenate([np.zeros((2, 3)), C.T], axis=1),
         np.concatenate([np.zeros((1, 3)), np.ones((1, F))], axis=1)],
        axis=0)
    return np.linalg.inv(delta_C)                                   # (F+3, F+3)


def build_P_hat(C, P, F, eps=1e-6):
    n = P.shape[0]
    P_diff = P[:, None, :] - C[None, :, :]
    rbf_norm = np.linalg.norm(P_diff, axis=2)
    rbf = np.square(rbf_norm) * np.log(rbf_norm + eps)
    return np.concatenate([np.ones((n, 1)), P, rbf], axis=1)        # (n, F+3)


def get_initial_fiducials(F):
    x = np.linspace(-1.0, 1.0, F // 2)
    top = np.stack([x, np.linspace(0.0, -1.0, F // 2)], axis=1)
    bot = np.stack([x, np.linspace(1.0, 0.0, F // 2)], axis=1)
    return np.concatenate([top, bot], axis=0)                       # (F, 2)


def init_params(key, in_channels, num_fiducial, H, W, model_name="small"):
    F = num_fiducial
    if model_name == "large":
        num_filters_list = [64, 128, 256, 512]
        fc_dim = 256
    else:
        num_filters_list = [16, 32, 64, 128]
        fc_dim = 64
    # BN eval mode, fresh stats (gamma=1, beta=0, mean=0, var=1).
    # NOTE: with a real checkpoint the running mean/var + affine params must be folded here.
    bn_scale = 1.0 / np.sqrt(1.0 + 1e-5)

    keys = jax.random.split(key, 8)
    convs = []
    cin = in_channels
    for i, cout in enumerate(num_filters_list):
        w = jax.random.normal(keys[i], (3, 3, cin, cout), jnp.float32) * 0.1
        # Folded BN, transposed to (Cout, 9*Cin) bf16 so the conv kernel's single K=9*Cin
        # matmul emits lane-dense (Cout, n) tiles.
        w_t = jnp.transpose((w * bn_scale).reshape(9 * cin, cout)).astype(jnp.bfloat16)
        b_t = jnp.zeros((cout, 1), jnp.float32)
        convs.append((w_t, b_t))
        cin = cout

    fc1_w = jax.random.normal(keys[4], (num_filters_list[-1], fc_dim), jnp.float32) * 0.05
    fc1_b = jnp.zeros((1, fc_dim), jnp.float32)
    # RARE init: fc2 weight zero, bias = initial fiducials
    fc2_w = jnp.zeros((fc_dim, F * 2), jnp.float32)
    fc2_b = jnp.asarray(get_initial_fiducials(F).reshape(-1), jnp.float32)
    ex_w = jax.random.normal(keys[5], (F * 2, 6), jnp.float32) * 0.05
    ex_b = jnp.zeros((6,), jnp.float32)

    # Exact reparameterization: split interleaved (x, y) columns so the fused head kernel
    # needs no in-kernel reshape / transpose / strided slicing.
    w2x, w2y = fc2_w[:, 0::2], fc2_w[:, 1::2]
    b2x, b2y = fc2_b[0::2].reshape(1, F), fc2_b[1::2].reshape(1, F)
    wxx, wxy = ex_w[0::2, 0::2], ex_w[0::2, 1::2]
    wyx, wyy = ex_w[1::2, 0::2], ex_w[1::2, 1::2]
    bex_x, bex_y = ex_b[0::2].reshape(1, 3), ex_b[1::2].reshape(1, 3)

    C = build_C(F)
    P = build_P(H, W)
    inv_delta_C = build_inv_delta_C(C, F)
    P_hat = build_P_hat(C, P, F)
    Phi = P_hat @ inv_delta_C                           # (n, F+3), float64, host-folded
    A_top = jnp.asarray(np.ascontiguousarray(Phi[:, :F].T), jnp.float32)   # (F, n)
    A_bot = jnp.asarray(np.ascontiguousarray(Phi[:, F:].T), jnp.float32)   # (3, n)

    return {
        "convs": convs,
        "fc1_w": fc1_w, "fc1_b": fc1_b,
        "w2x": w2x, "b2x": b2x, "w2y": w2y, "b2y": b2y,
        "wxx": wxx, "wyx": wyx, "wxy": wxy, "wyy": wyy,
        "bex_x": bex_x, "bex_y": bex_y,
        "A_top": A_top, "A_bot": A_bot,
    }


# ----------------------------------------------------------------------------
# TPS forward
# ----------------------------------------------------------------------------
def tps_forward(image_nchw, params, num_fiducial):
    """image_nchw: (B, C, H, W) float32 -> rectified image (B, C, H, W)."""
    image_nchw = image_nchw.astype(jnp.float32)
    B, Cimg, H, W = image_nchw.shape

    # ---------------- LocalizationNetwork (NCHW, bf16 activations) ----------------
    h = image_nchw
    n_layers = len(params["convs"])
    for i, (w_t, b_t) in enumerate(params["convs"]):
        Hc, Wc = h.shape[2], h.shape[3]
        band_in = image_to_band(h)                       # pad + flatten + bf16 (XLA glue)
        band_out = conv3x3(band_in, w_t, b_t, Hc, Wc)    # fused conv+BN+ReLU (Pallas)
        h = band_to_image(band_out, Hc, Wc)              # (B, Cout, Hc, Wc) bf16
        if i < n_layers - 1:
            h = maxpool2x2(h)                            # MaxPool2d(2, 2)
    feat = jnp.mean(h.astype(jnp.float32), axis=(2, 3))  # AdaptiveAvgPool2d(1) -> (B, 128)
    # TODO(synk): fuse the 2x2 max-pool and next-layer zero-pad into the conv epilogue to
    # drop the remaining per-layer band<->image HBM round trips.

    # -------- fc1 + relu + fc2 + ex_fc + TPS grid (single fused Pallas kernel) --------
    grid_x, grid_y = loc_head_and_grid(feat, params, H * W)   # each (B, H*W), lane-dense

    # ---------------- grid_sample (bilinear, zeros, align_corners=False) ----------------
    img_rows = image_nchw.reshape(B, Cimg * H, W).astype(jnp.bfloat16)
    out_flat = grid_sample_bilinear(grid_x.reshape(B, 1, H * W),
                                    grid_y.reshape(B, 1, H * W),
                                    img_rows, H, W)       # (B, C, H*W) f32
    return out_flat.reshape(B, Cimg, H, W)


if __name__ == "__main__":
    key = jax.random.PRNGKey(0)
    k_img, k_par = jax.random.split(key)

    B, C, H, W = 2, 4, 16, 16
    num_fiducial = 20

    image = jax.random.normal(k_img, (B, C, H, W), jnp.float32)
    params = init_params(k_par, C, num_fiducial, H, W)

    out = tps_forward(image, params, num_fiducial)
    out = jax.block_until_ready(out)

    assert out.shape == (B, C, H, W), out.shape
    assert bool(jnp.all(jnp.isfinite(out)))
    print("KERNEL_OK")
</pallas_src>

<mosaic_0001>
module attributes {stable_mosaic.version = 11 : i64} {
  func.func @_conv3x3_kernel(%arg0: i32, %arg1: memref<1x4x324xbf16, #tpu.memory_space<vmem>>, %arg2: memref<16x36xbf16, #tpu.memory_space<vmem>>, %arg3: memref<16x1xf32, #tpu.memory_space<vmem>>, %arg4: memref<1x16x286xbf16, #tpu.memory_space<vmem>>) attributes {dimension_semantics = [#tpu.dimension_semantics<parallel>], iteration_bounds = array<i64: 2>, scalar_prefetch = 0 : i64, scratch_operands = 0 : i64, tpu.core_type = #tpu.core_type<tc>, window_params = [{transform_indices = @transform_0, window_bounds = array<i64: 1, 4, 324>}, {pipeline_mode = #tpu.pipeline_mode<synchronous>, transform_indices = @transform_1, window_bounds = array<i64: 16, 36>}, {pipeline_mode = #tpu.pipeline_mode<synchronous>, transform_indices = @transform_2, window_bounds = array<i64: 16, 1>}, {transform_indices = @transform_3, window_bounds = array<i64: 1, 16, 286>}]} {
    %c0 = arith.constant 0 : index
    %c0_0 = arith.constant 0 : index
    %c0_1 = arith.constant 0 : index
    %0 = vector.load %arg1[%c0, %c0_0, %c0_1] : memref<1x4x324xbf16, #tpu.memory_space<vmem>>, vector<1x4x324xbf16>
    %1 = vector.shape_cast %0 : vector<1x4x324xbf16> to vector<4x324xbf16>
    %2 = vector.extract_strided_slice %1 {offsets = [0, 0], sizes = [4, 286], strides = [1, 1]} : vector<4x324xbf16> to vector<4x286xbf16>
    %3 = vector.extract_strided_slice %1 {offsets = [0, 1], sizes = [4, 286], strides = [1, 1]} : vector<4x324xbf16> to vector<4x286xbf16>
    %4 = vector.extract_strided_slice %1 {offsets = [0, 2], sizes = [4, 286], strides = [1, 1]} : vector<4x324xbf16> to vector<4x286xbf16>
    %5 = vector.extract_strided_slice %1 {offsets = [0, 18], sizes = [4, 286], strides = [1, 1]} : vector<4x324xbf16> to vector<4x286xbf16>
    %6 = vector.extract_strided_slice %1 {offsets = [0, 19], sizes = [4, 286], strides = [1, 1]} : vector<4x324xbf16> to vector<4x286xbf16>
    %7 = vector.extract_strided_slice %1 {offsets = [0, 20], sizes = [4, 286], strides = [1, 1]} : vector<4x324xbf16> to vector<4x286xbf16>
    %8 = vector.extract_strided_slice %1 {offsets = [0, 36], sizes = [4, 286], strides = [1, 1]} : vector<4x324xbf16> to vector<4x286xbf16>
    %9 = vector.extract_strided_slice %1 {offsets = [0, 37], sizes = [4, 286], strides = [1, 1]} : vector<4x324xbf16> to vector<4x286xbf16>
    %10 = vector.extract_strided_slice %1 {offsets = [0, 38], sizes = [4, 286], strides = [1, 1]} : vector<4x324xbf16> to vector<4x286xbf16>
    %11 = tpu.concatenate %2, %3, %4, %5, %6, %7, %8, %9, %10 in 0 : vector<4x286xbf16>, vector<4x286xbf16>, vector<4x286xbf16>, vector<4x286xbf16>, vector<4x286xbf16>, vector<4x286xbf16>, vector<4x286xbf16>, vector<4x286xbf16>, vector<4x286xbf16> -> vector<36x286xbf16>
    %c0_2 = arith.constant 0 : index
    %c0_3 = arith.constant 0 : index
    %12 = vector.load %arg2[%c0_2, %c0_3] : memref<16x36xbf16, #tpu.memory_space<vmem>>, vector<16x36xbf16>
    %cst = arith.constant dense<0.000000e+00> : vector<16x286xf32>
    %13 = tpu.matmul %12, %11, %cst {dimension_numbers = #tpu.dot_dimension_numbers<[1], [0], [0], [1], [0, 0, 1, 1], [], []>} : vector<16x36xbf16>, vector<36x286xbf16>, vector<16x286xf32> -> vector<16x286xf32>
    %c0_4 = arith.constant 0 : index
    %c0_5 = arith.constant 0 : index
    %14 = vector.load %arg3[%c0_4, %c0_5] : memref<16x1xf32, #tpu.memory_space<vmem>>, vector<16x1xf32>
    %15 = vector.broadcast %14 : vector<16x1xf32> to vector<16x286xf32>
    %16 = arith.addf %13, %15 : vector<16x286xf32>
    %cst_6 = arith.constant 0.000000e+00 : f32
    %17 = vector.broadcast %cst_6 : f32 to vector<16x286xf32>
    %18 = arith.maximumf %16, %17 : vector<16x286xf32>
    %19 = arith.truncf %18 : vector<16x286xf32> to vector<16x286xbf16>
    %c0_7 = arith.constant 0 : index
    %c0_8 = arith.constant 0 : index
    %c0_9 = arith.constant 0 : index
    %20 = vector.load %arg4[%c0_7, %c0_8, %c0_9] : memref<1x16x286xbf16, #tpu.memory_space<vmem>>, vector<1x16x286xbf16>
    %21 = vector.shape_cast %20 : vector<1x16x286xbf16> to vector<16x286xbf16>
    %22 = vector.shape_cast %19 : vector<16x286xbf16> to vector<1x16x286xbf16>
    tpu.vector_store %arg4[%c0_7, %c0_8, %c0_9], %22 {strides = array<i32>} : memref<1x16x286xbf16, #tpu.memory_space<vmem>>, vector<1x16x286xbf16>,
    return
  }
  func.func @transform_0(%arg0: i32) -> (i32, i32, i32) {
    %c0_i32 = arith.constant 0 : i32
    %c0_i32_0 = arith.constant 0 : i32
    %c0_i32_1 = arith.constant 0 : i32
    return %arg0, %c0_i32, %c0_i32_0 : i32, i32, i32
  }
  func.func @transform_1(%arg0: i32) -> (i32, i32) {
    %c0_i32 = arith.constant 0 : i32
    %c0_i32_0 = arith.constant 0 : i32
    %c0_i32_1 = arith.constant 0 : i32
    return %c0_i32, %c0_i32_0 : i32, i32
  }
  func.func @transform_2(%arg0: i32) -> (i32, i32) {
    %c0_i32 = arith.constant 0 : i32
    %c0_i32_0 = arith.constant 0 : i32
    %c0_i32_1 = arith.constant 0 : i32
    return %c0_i32, %c0_i32_0 : i32, i32
  }
  func.func @transform_3(%arg0: i32) -> (i32, i32, i32) {
    %c0_i32 = arith.constant 0 : i32
    %c0_i32_0 = arith.constant 0 : i32
    %c0_i32_1 = arith.constant 0 : i32
    return %arg0, %c0_i32, %c0_i32_0 : i32, i32, i32
  }
}

</mosaic_0001>

<bundles_post_ra>
// kernel: tpu_custom_call.1
= control target key start
LH: loop header
LB: loop body
LE: loop exit
PB: predicated region body
PF: predicated region fallthrough
CT: control target
= control target key end

     0   :  { %8 = vsyncpa [#allocation3], 0  ;;  %s904_s0 = inlined_call_operand.vmem [shape: bf16[2,4,324], index: 0, kind: input, shape index: {}]   ;;  %s905_s1 = inlined_call_operand.vmem [shape: bf16[16,36], index: 1, kind: input, shape index: {}]   ;;  %s906_s2 = inlined_call_operand.vmem [shape: f32[16,1], index: 2, kind: input, shape index: {}]   ;;  %s907_s3 = inlined_call_operand.hbm [shape: bf16[2,16,286], index: 3, kind: output, shape index: {}]  }
   0x1   :  { %10 = vsyncpa [#allocation3 + $0x1], 0  ;;  %s740_s12 = smov 0   ;;  %s742_s13 = smov 0  }
   0x2   :  { %s744_s14 = smov 0   ;;  %s746_s15 = smov 0  }
   0x3 LB: > { %s761_s16 = sadd.s32 4294967295, %s703_s15   ;;  %s546_s17 = sadd.s32 4294967294, %s703_s15   ;;  %s703_s15 = sphi %s746_s15, %s913_s15   ;;  %s699_s14 = sphi %s744_s14, %s912_s14   ;;  %s695_s13 = sphi %s742_s13, %s911_s13   ;;  %s691_s12 = sphi %s740_s12, %s910_s12  }
   0x4   : > { %s765_s18 = sadd.s32 1, %s703_s15   ;;  %s91_s19 = sadd.s32 1, %s699_s14 }
   0x5   : > { %s88_s20 = ssub.s32 %s703_s15, %s765_s18  ;;  %p101_p0 = scmp.ne.s32.totalorder %s699_s14, %s695_s13 }
   0x6   : > { %p89_p1 = scmp.eq.s32.totalorder %s88_s20, 0  ;;  %p102_p2 = scmp.eq.s32.totalorder %s761_s16, 1 }
   0x7   : > { %p107_p3 = scmp.ne.s32.totalorder %s695_s13, %s691_s12  ;;  %p108_p4 = scmp.eq.s32.totalorder %s546_s17, 1 }
   0x8   : > { %s776_s21 = scalar_select %p89_p1, %s699_s14, %s91_s19  }
   0x9   : > { %p778_p5 = por %p102_p2, %p101_p0  ;;  %p782_p6 = por %p108_p4, %p107_p3 }
   0xa   : > { %p549_p7 = scmp.ge.s32.totalorder %s703_s15, 1  ;;  %p140_p8 = scmp.lt.s32.totalorder %s703_s15, 3 }
   0xc   : > { %p141_p9 = pnand %p549_p7, %p140_p8 }
   0xd   : > { %p164_p10 = scmp.lt.s32.totalorder (!%p141_p9), %s761_s16, 1  ;;  %v176_v0 = vlaneseq (!%p141_p9)  ;;  %v705_v1 = vmov (!%p141_p9), 1983009808   ;;  %s706_s29 = smov (!%p141_p9), 126   ;;  %v708_v11 = vmov (!%p141_p9), 0.0   ;;  %vm713_vm0 = vmmov (!%p141_p9), 0  }
   0xe   : > { %144 = sbr.rel (%p141_p9) target bundleno = 429 (0x1ad), region = 32  ;;  %v174_v2 = vunpack.c.l.s4 (!%p141_p9), %v705_v1  ;;  %s707_s30 = smov (!%p141_p9), 127   ;;  %570 = vmatprep.subr.bf16.mxu1 (!%p141_p9), %v708_v11  ;;  %576 = vmatprep.mubr.msk.bf16.mxu1 (!%p141_p9), %vm713_vm0, %v708_v11  ;;  %v714_v18 = vmov (!%p141_p9), 0   ;;  %v325_v19 = vld [vmem:[%s906_s2] sm:$0xff] (!%p141_p9)  ;;  %v326_v20 = vld [vmem:[%s906_s2 + $0x8] sm:$0xff] (!%p141_p9)  ;;  %vm203_vm1 = vcmask (!%p141_p9), 1039360  }
   0xf   : > { %v177_v3 = vshrl.u32 (!%p141_p9), %v176_v0, 7  ;;  %s709_s4 = smov (!%p141_p9), 110   ;;  %s710_s5 = smov (!%p141_p9), 109   ;;  %387 = vmatprep.mubr.bf16.mxu0 (!%p141_p9), %v714_v18  ;;  %636 = vset.pattern.permute.xlu0 (!%p141_p9), %v714_v18  ;;  %vm272_vm2 = vcmask (!%p141_p9), 1041408   ;;  %vm224_vm3 = vcmask (!%p141_p9), 900096   ;;  %vm214_vm4 = vcmask (!%p141_p9), 1031168  }
  0x10   : > { %v175_v4 = vunpack.c.0.s8 (!%p141_p9), %v174_v2  ;;  %s711_s6 = smov (!%p141_p9), 108   ;;  %s712_s7 = smov (!%p141_p9), 92   ;;  %637 = vset.pattern.permute.xlu1 (!%p141_p9), %v714_v18  ;;  %vm289_vm5 = vcmask (!%p141_p9), 1045504   ;;  %vm282_vm6 = vcmask (!%p141_p9), 1043456   ;;  %vm242_vm7 = vcmask (!%p141_p9), 883712  }
  0x11   : > { %s715_s8 = smov (!%p141_p9), 91   ;;  %s716_s9 = smov (!%p141_p9), 90   ;;  %vm251_vm8 = vcmask (!%p141_p9), 752640   ;;  %vm233_vm9 = vcmask (!%p141_p9), 891904   ;;  %vm260_vm10 = vcmask (!%p141_p9), 744448   ;;  %vm269_vm11 = vcmask (!%p141_p9), 736256  }
  0x12   : > { %v178_v5 = vsub.s32 (!%p141_p9), %v175_v4, %v177_v3  ;;  %vm342_vm12 = vcmask (!%p141_p9), 293888   ;;  %vm466_vm13 = vcmask (!%p141_p9), 240640   ;;  %s582_s27 = smul.u32 (!%p141_p9), 384, %s761_s16 }
  0x15   : > { %s165_s24 = scalar_select %p164_p10, %s761_s16, 1 }
  0x17   : > { %s581_s25 = smul.u32 6, %s165_s24 }
  0x19   : > { %s168_s28 = scalar_lea.vmem %s904_s0, %s581_s25  ;;  %s161_s25 = sand.u32 1, %s695_s13  }
  0x1a   : > { %v170_v6 = vld [vmem:[%s168_s28] sm:$0x3f]  ;;  %s580_s26 = smul.u32 24, %s161_s25  ;;  %s863_s16 = scalar_lea.sflag [#allocation3], %s161_s25 }
  0x1b   : > { %v793_v7 = vrot.slane %v170_v6, %v178_v5  ;;  %v188_v8 = vcombine.low %v170_v6, %v170_v6  ;;  %v172_v10 = vcombine.high %v170_v6, %v170_v6 }
  0x1c   : > { %s163_s28 = scalar_lea.vmem [#allocation2], %s580_s26 }
  0x1d   : > { %210 = vrot.lane.b32.xlu1 %v793_v7, %s706_s29  ;;  %201 = vrot.lane.b32.xlu0 %v793_v7, %s707_s30  ;;  %v195_v9 = vrot.slane %v188_v8, %v178_v5  ;;  %v206_v13 = vcombine.low %v793_v7, %v793_v7  ;;  %v186_v14 = vrot.slane %v172_v10, %v178_v5 }
  0x1e   : > { %v187_v16 = vcombine.high %v793_v7, %v793_v7 }
  0x1f   : > { %v196_v12 = vcombine.high %v195_v9, %v195_v9  ;;  %v207_v15 = vcombine.low %v186_v14, %v186_v14  ;;  %v217_v17 = vcombine.low %v195_v9, %v195_v9 }
  0x21   : > { %197 = vrot.lane.b32.xlu1 %v195_v9, %s707_s30  ;;  %220 = vrot.lane.b32.xlu0 %v195_v9, %s709_s4 }
  0x25   : > { %199 = vrot.lane.b32.xlu0 %v196_v12, %s707_s30  ;;  %208 = vrot.lane.b32.xlu1 %v206_v13, %s706_s29 }
  0x29   : > { %222 = vrot.lane.b32.xlu1 %v206_v13, %s709_s4  ;;  %212 = vrot.lane.b32.xlu0 %v207_v15, %s706_s29  ;;  %s484_s29 = sshll.u32 %s163_s28, 4  ;;  %s858_s29 = int_to_ptr.vmem [resolvable:$true] %s484_s29 }
  0x2d   : > { %229 = vrot.lane.b32.xlu1 %v187_v16, %s710_s5  ;;  %218 = vrot.lane.b32.xlu0 %v217_v17, %s709_s4 }
  0x31   : > { %238 = vrot.lane.b32.xlu1 %v196_v12, %s711_s6  ;;  %231 = vrot.lane.b32.xlu0 %v186_v14, %s710_s5 }
  0x35   : > { %227 = vrot.lane.b32.xlu1 %v793_v7, %s710_s5  ;;  %240 = vrot.lane.b32.xlu0 %v793_v7, %s711_s6  ;;  %s856_s5 = scalar_lea.hbm %s907_s3, %s582_s27 }
  0x39   : > { %247 = vrot.lane.b32.xlu1 %v793_v7, %s712_s7  ;;  %236 = vrot.lane.b32.xlu0 %v195_v9, %s711_s6  ;;  %s641_s6 = scalar_lea.vmem %s858_s29, 384 }
  0x3a   : > { %p642_p11 = scmp.ne.s32.totalorder %s858_s29, %s641_s6 }
  0x3c   : > { %p643_p12 = pnand %p642_p11, %p778_p5 }
  0x3d   : > { %245 = vrot.lane.b32.xlu1 %v206_v13, %s712_s7  ;;  %249 = vrot.lane.b32.xlu0 %v207_v15, %s712_s7  ;;  %s717_s7 = smov [#allocation2]  }
  0x3e   : > { %p644_p13 = pneg %p643_p12 }
  0x41   : > { %258 = vrot.lane.b32.xlu1 %v206_v13, %s715_s8  ;;  %256 = vrot.lane.b32.xlu0 %v195_v9, %s715_s8 }
  0x45   : > { %263 = vrot.lane.b32.xlu1 %v793_v7, %s716_s9  ;;  %254 = vrot.lane.b32.xlu0 %v217_v17, %s715_s8  ;;  %s645_s8 = sshll.u32 %s717_s7, 4  ;;  %s646_s8 = int_to_ptr.vmem [resolvable:$false] %s645_s8 }
  0x46   : > { %p648_p0 = scmp.lt.s32.totalorder %s858_s29, %s646_s8 }
  0x49   : > { %267 = vrot.lane.b32.xlu1 %v186_v14, %s716_s9  ;;  %265 = vrot.lane.b32.xlu0 %v187_v16, %s716_s9  ;;  %s647_s9 = scalar_lea.vmem %s646_s8, 768 }
  0x4a   : > { %p649_p1 = scmp.lt.s32.totalorder %s647_s9, %s641_s6 }
  0x4c   : > { %p650_p2 = por %p649_p1, %p648_p0 }
  0x4d   : > { %329 = vperm.xlu0 %636, %v325_v19   ;;  %334 = vperm.xlu1 %637, %v326_v20  }
  0x4e   : > { %p651_p3 = pnand %p650_p2, %p644_p13 }
  0x8f   : > { %v211_v21 = vpop.permute.xlu1 %210  ;;  %v202_v22 = vpop.permute.xlu0 %201 }
  0x90   : > { %v281_v29 = vsel %vm272_vm2, %v186_v14, %v202_v22 }
  0x93   : > { %v198_v23 = vpop.permute.xlu1 %197  ;;  %v221_v24 = vpop.permute.xlu0 %220 }
  0x97   : > { %v200_v25 = vpop.permute.xlu0 %199  ;;  %v209_v26 = vpop.permute.xlu1 %208 }
  0x98   : > { %v205_v27 = vsel %vm203_vm1, %v200_v25, %v202_v22  ;;  %v204_v28 = vsel %vm203_vm1, %v198_v23, %v200_v25  ;;  %v215_v37 = vsel %vm214_vm4, %v209_v26, %v211_v21 }
  0x99   : > { %v278_v32 = vsel %vm272_vm2, %v187_v16, %v205_v27  ;;  %v275_v36 = vsel %vm272_vm2, %v793_v7, %v204_v28  ;;  %v640_v16 = vld [vmem:[%s905_s1] sm:$0xff]  }
  0x9a   : > { %v284_v44 = vsel %vm282_vm6, %v275_v36, %v215_v37 }
  0x9b   : > { %v223_v30 = vpop.permute.xlu1 %222  ;;  %v213_v31 = vpop.permute.xlu0 %212 }
  0x9c   : > { %v226_v33 = vsel %vm224_vm3, %v221_v24, %v223_v30  ;;  %v216_v34 = vsel %vm214_vm4, %v211_v21, %v213_v31  ;;  %v288_v35 = vsel %vm282_vm6, %v281_v29, %v213_v31 }
  0x9d   : > { %v297_v38 = vsel %vm289_vm5, %v288_v35, %v223_v30  ;;  %v286_v39 = vsel %vm282_vm6, %v278_v32, %v216_v34 }
  0x9e   : > { %571 = vmatpush3.bf16.msra.mxu1 %v297_v38  ;;  %v294_v40 = vsel %vm289_vm5, %v286_v39, %v226_v33 }
  0x9f   : > { %v230_v41 = vpop.permute.xlu1 %229  ;;  %355 = vmatprep.subr.bf16.mxu0 %v294_v40  ;;  %v219_v42 = vpop.permute.xlu0 %218  ;;  %572 = vmatprep.subr.bf16.mxu1 %v708_v11 }
  0xa0   : > { %v225_v43 = vsel %vm224_vm3, %v219_v42, %v221_v24 }
  0xa1   : > { %v291_v45 = vsel %vm289_vm5, %v284_v44, %v225_v43 }
  0xa2   : > { %356 = vmatpush1.bf16.msra.mxu0 %v291_v45 }
  0xa3   : > { %v239_v46 = vpop.permute.xlu1 %238  ;;  %v232_v47 = vpop.permute.xlu0 %231 }
  0xa4   : > { %v235_v56 = vsel %vm233_vm9, %v230_v41, %v232_v47 }
  0xa7   : > { %v228_v48 = vpop.permute.xlu1 %227  ;;  %v241_v49 = vpop.permute.xlu0 %240 }
  0xa8   : > { %v244_v54 = vsel %vm242_vm7, %v239_v46, %v241_v49  ;;  %v307_v57 = vsel %vm272_vm2, %v232_v47, %v241_v49  ;;  %v234_v4 = vsel %vm233_vm9, %v228_v48, %v230_v41 }
  0xa9   : > { %v304_v58 = vsel %vm272_vm2, %v235_v56, %v244_v54 }
  0xab   : > { %v248_v50 = vpop.permute.xlu1 %247  ;;  %v237_v51 = vpop.permute.xlu0 %236 }
  0xac   : > { %v243_v62 = vsel %vm242_vm7, %v237_v51, %v239_v46 }
  0xad   : > { %v301_v5 = vsel %vm272_vm2, %v234_v4, %v243_v62 }
  0xaf   : > { %v246_v52 = vpop.permute.xlu1 %245  ;;  %v250_v53 = vpop.permute.xlu0 %249 }
  0xb0   : > { %v253_v55 = vsel %vm251_vm8, %v248_v50, %v250_v53  ;;  %v313_v59 = vsel %vm282_vm6, %v307_v57, %v250_v53  ;;  %v252_v2 = vsel %vm251_vm8, %v246_v52, %v248_v50 }
  0xb1   : > { %v311_v1 = vsel %vm282_vm6, %v304_v58, %v253_v55  ;;  %v309_v9 = vsel %vm282_vm6, %v301_v5, %v252_v2 }
  0xb3   : > { %v259_v60 = vpop.permute.xlu1 %258  ;;  %v257_v61 = vpop.permute.xlu0 %256 }
  0xb4   : > { %v262_v63 = vsel %vm260_vm10, %v257_v61, %v259_v60  ;;  %v321_v0 = vsel %vm289_vm5, %v313_v59, %v259_v60 }
  0xb5   : > { %573 = vmatpush3.bf16.msra.mxu1 %v321_v0  ;;  %v318_v3 = vsel %vm289_vm5, %v311_v1, %v262_v63 }
  0xb6   : > { %357 = vmatprep.subr.bf16.mxu0 %v318_v3  ;;  %574 = vmatprep.subr.bf16.mxu1 %v708_v11 }
  0xb7   : > { %v264_v6 = vpop.permute.xlu1 %263  ;;  %v255_v7 = vpop.permute.xlu0 %254 }
  0xb8   : > { %v261_v8 = vsel %vm260_vm10, %v255_v7, %v257_v61 }
  0xb9   : > { %v315_v10 = vsel %vm289_vm5, %v309_v9, %v261_v8 }
  0xba   : > { %358 = vmatpush1.bf16.msra.mxu0 %v315_v10 }
  0xbb   : > { %v268_v12 = vpop.permute.xlu1 %267  ;;  %v266_v13 = vpop.permute.xlu0 %265 }
  0xbc   : > { %v270_v14 = vsel %vm269_vm11, %v264_v6, %v266_v13  ;;  %v271_v15 = vsel %vm269_vm11, %v266_v13, %v268_v12  ;;  %v353_v11 = vsel %vm272_vm2, %v268_v12, 0 }
  0xbd   : > { %552 = vmatprep.subr.msk.bf16.mxu0 %vm272_vm2, %v271_v15  ;;  %575 = vmatpush3.bf16.msra.mxu1 %v353_v11  ;;  %v347_v17 = vsel %vm272_vm2, %v270_v14, 0 }
  0xbe   : > { %360 = vmatpush1.bf16.msra.mxu0 %v347_v17 }
  0xc0   : > { %577 = vmatmul.mubr.msk.bf16.vlgmr.msra.gmra.mrb[0].mxu1 %vm342_vm12, %v640_v16 }
  0xc1   : > { %553 = vmatmul.mubr.msk.bf16.vlgmr.msra.gmra.mrb[0].mxu0 %vm342_vm12, %v640_v16 }
  0xcc   : > { %v330_v18 = vpop.permute.xlu0 %329  ;;  %v335_v20 = vpop.permute.xlu1 %334 }
 0x193   : > { %v432_v19 = vpop.f32.mrb[0].mxu1 }
 0x194   : > { %v389_v21 = vpop.f32.mrb[0].mxu0  ;;  %v578_v22 = vpop.f32.mrb[1].mxu1  ;;  %v433_v23 = vadd.f32 %v432_v19, %v330_v18 }
 0x195   : > { %v390_v24 = vadd.f32 %v389_v21, %v330_v18  ;;  %v391_v25 = vpop.f32.mrb[1].mxu0  ;;  %v435_v26 = vpop.f32.mrb[2].mxu1 }
 0x196   : > { %v441_v27 = vmax.f32 %v433_v23, 0.0  ;;  %v392_v28 = vadd.f32 %v391_v25, %v330_v18  ;;  %v436_v29 = vadd.f32 %v435_v26, %v335_v20  ;;  %v393_v30 = vpop.f32.mrb[2].mxu0  ;;  %v579_v31 = vpop.f32.mrb[3].mxu1 }
 0x197   : > { %v439_v32 = vmax.f32 %v390_v24, 0.0  ;;  %v394_v33 = vadd.f32 %v393_v30, %v335_v20  ;;  %v395_v34 = vpop.f32.mrb[3].mxu0 }
 0x198   : > { %v563_v35 = vpack.c.bf16 %v441_v27, %v441_v27  ;;  %v440_v36 = vmax.f32 %v392_v28, 0.0  ;;  %v444_v37 = vmax.f32 %v436_v29, 0.0  ;;  %v396_v38 = vadd.f32 %v395_v34, %v335_v20 }
 0x199   : > { %v442_v39 = vmax.f32 %v394_v33, 0.0 }
 0x19a   : > { %467 = vst.msk [vmem:[%s163_s28 + $0x8] sm:$0xf] %vm466_vm13, %v563_v35  ;;  %v562_v40 = vpack.c.bf16 %v440_v36, %v439_v32  ;;  %v565_v41 = vpack.c.bf16 %v444_v37, %v444_v37  ;;  %v443_v42 = vmax.f32 %v396_v38, 0.0 }
 0x19c   : > { %465 = vst [vmem:[%s163_s28] sm:$0xff] %v562_v40  ;;  %469 = vst.msk [vmem:[%s163_s28 + $0x14] sm:$0xf] %vm466_vm13, %v565_v41  ;;  %v564_v43 = vpack.c.bf16 %v443_v42, %v442_v39 }
 0x19e   : > { %468 = vst [vmem:[%s163_s28 + $0xc] sm:$0xff] %v564_v43 }
 0x19f   : > { %654 = shalt.err (!%p651_p3)
}
 0x1a0   : > { %s655_s10 = scalar_lea.hbm %s856_s5, 384  ;;  %s659_s19 = scalar_lea.hbm %s907_s3, 768 }
 0x1a1   : > { %p656_p4 = scmp.ne.s32.totalorder %s856_s5, %s655_s10  ;;  %p660_p9 = scmp.lt.u32.totalorder %s856_s5, %s907_s3 }
 0x1a2   : > { %p661_p10 = scmp.lt.u32.totalorder %s659_s19, %s655_s10  ;;  %p663_p12 = scmp.lt.u32.totalorder %s655_s10, %s856_s5 }
 0x1a3   : > { %p657_p7 = pnand %p656_p4, %p778_p5 }
 0x1a4   : > { %p662_p11 = por %p661_p10, %p660_p9 }
 0x1a5   : > { %p658_p8 = pneg %p657_p7 }
 0x1a6   : > { %p664_p13 = por %p663_p12, %p662_p11 }
 0x1a8   : > { %p665_p0 = pnand %p664_p13, %p658_p8 }
 0x1aa   : > { %668 = shalt.err (!%p665_p0)
}
 0x1ab   : > { %s718_s25 = smov 192   ;;  %s719_s26 = smov 12  }
 0x1ac   : > { %583 = dma.vmem_to_hbm [thread:$0]  (%p778_p5), %s858_s29, 384, %s856_s5, %s863_s16, %s718_s25, %s718_s25, %s719_s26  }
 0x1ad PF: > { %p589_p1 = scmp.ge.s32.totalorder %s703_s15, 2  ;;  %s499_s27 = sand.u32 1, %s691_s12  }
 0x1ae   : > { %s500_s28 = scalar_lea.sflag [#allocation3], %s499_s27 }
 0x1af   : > { %p586_p2 = pnand %p589_p1, %p782_p6 }
 0x1b1   : > { %686 = dma.done.wait (!%p586_p2), %s500_s28, 384  }
 0x1b2   : > { %688 = vsyncadd (!%p586_p2), %s500_s28, 4294966912  ;;  %p13_p3 = scmp.ge.s32.totalorder %s765_s18, 4   ;;  %s910_s12 = smov %s695_s13 }
 0x1b3   : > { %s911_s13 = smov %s699_s14  ;;  %s912_s14 = smov %s776_s21 }
 0x1b4   : > { %s913_s15 = smov %s765_s18  ;;  %15 = sbr.rel (!%p13_p3) target bundleno = 3 (0x3), region = 67 }
 0x1bb   :  { %505 = vsyncpa [#allocation3], 1 }
 0x1bc   :  { %507 = vsyncpa [#allocation3 + $0x1], 1 }

</bundles_post_ra>
